<compile_context>
chip_gen: v7x
topology: tpu7x:2x2x1
jax: 0.10.0
libtpu: 0.0.40
codegen_flags: <defaults>
</compile_context>

<pallas_src>
import jax
import jax.numpy as jnp
from jax.experimental import pallas as pl
from jax.experimental.pallas import tpu as pltpu

_LANE = 128


# ---------------------------------------------------------------------------
# Pallas kernels (the hot paths)
# ---------------------------------------------------------------------------

def _conv_kernel(a_ref, w_ref, o_ref):
    """One M-tile of the stride-2 conv: out = relu(A(tm,9*Cin) @ W(9*Cin,Cout_pad)).

    All 9 taps live in the K dimension, so this is a single MXU matmul per
    grid step (no reduction grid axis, no accumulator scratch, no per-tap
    read-modify-write).  The weight block index is constant across the grid,
    so Pallas keeps it resident in VMEM instead of re-DMAing it per step.
    """
    acc = jnp.dot(a_ref[...], w_ref[...], preferred_element_type=jnp.float32)
    o_ref[...] = jnp.maximum(acc, 0.0).astype(o_ref.dtype)


def _mask_interp_kernel(rb_ref, m_ref, c_ref, o_ref):
    """Nearest-neighbour mask resize for ALL batches in one launch.

    out = (Rb @ mask_flat @ C) >= 0.5, where Rb = blockdiag_N(R) is a one-hot
    row selector and C a one-hot column selector.  The bf16 matmuls are EXACT
    here only because Rb / C are one-hot and the mask is 0/1 -- keep that
    invariant if this is ever changed to bilinear / antialiased resizing.
    """
    rows = jnp.dot(rb_ref[...], m_ref[...],
                   preferred_element_type=jnp.float32)           # (N*Hf, W)
    sel = jnp.dot(rows.astype(jnp.bfloat16), c_ref[...],
                  preferred_element_type=jnp.float32)            # (N*Hf, Wf)
    o_ref[...] = (sel >= 0.5).astype(o_ref.dtype)


# ---------------------------------------------------------------------------
# Wrappers (glue: layout, im2col, selection-matrix construction)
# ---------------------------------------------------------------------------

def _pick_m_tile(M):
    """M-tile: as large as possible (>=512 rows hits ~85%+ of HBM roofline and
    amortizes the ~0.35us/step overhead) but capped at 1024 so double-buffered
    in/out blocks stay far under VMEM even on v7x (64 MiB), and shrunk so the
    'parallel' M axis always has >= 2 tiles for v7x's two TensorCores."""
    if M <= 8:
        return M
    tm = min(1024, (M // 8) * 8)              # sublane-aligned
    if pl.cdiv(M, tm) < 2:                    # keep the parallel axis splittable
        tm = (((M + 1) // 2 + 7) // 8) * 8
    return max(8, tm)


def conv3x3_s2_relu(x_nchw, w_oihw):
    """Synthetic backbone body: 3x3 conv, stride 2, pad 1, ReLU. NCHW in / out."""
    N, Cin, H, W = x_nchw.shape
    Cout = w_oihw.shape[0]
    Ho = (H - 1) // 2 + 1                     # true conv output size (odd H/W ok)
    Wo = (W - 1) // 2 + 1
    M = N * Ho * Wo
    K = 9 * Cin
    # TODO(synk): real layers with Cout >= 256 should pad to a multiple of 256
    #             so the 256-wide v6e/v7x MXU N dimension stays full.
    Cout_pad = ((Cout + _LANE - 1) // _LANE) * _LANE

    # glue: NCHW -> NHWC bf16 (MXU-native, halves HBM read traffic), pad=1.
    x = jnp.transpose(x_nchw, (0, 2, 3, 1)).astype(jnp.bfloat16)
    xp = jnp.pad(x, ((0, 0), (1, 1), (1, 1), (0, 0)))

    # glue: im2col in ONE XLA pass -> A (M, 9*Cin); tap (kh,kw) occupies columns
    # [(3*kh+kw)*Cin, (3*kh+kw+1)*Cin).  Single HBM write of A (no 9-way stack).
    # TODO(synk): stream taps straight from xp via manual (strided) DMA with
    #             memory_space=pl.ANY to remove even this 9x im2col blowup.
    cols = [xp[:, kh:kh + 2 * Ho - 1:2, kw:kw + 2 * Wo - 1:2, :]
            for kh in range(3) for kw in range(3)]
    A = jnp.concatenate(cols, axis=-1).reshape(M, K)

    # glue: weights -> (9*Cin, Cout_pad) bf16; row order (kh, kw, cin) matches A;
    # Cout zero-padded to a full 128-lane tile so the store is lane-dense.
    Wm = jnp.transpose(w_oihw, (2, 3, 1, 0)).reshape(K, Cout)
    Wm = jnp.pad(Wm, ((0, 0), (0, Cout_pad - Cout))).astype(jnp.bfloat16)

    tm = _pick_m_tile(M)
    m_tiles = pl.cdiv(M, tm)

    out = pl.pallas_call(
        _conv_kernel,
        out_shape=jax.ShapeDtypeStruct((M, Cout_pad), jnp.bfloat16),
        grid=(m_tiles,),
        in_specs=[pl.BlockSpec((tm, K), lambda i: (i, 0)),
                  # full weight block, constant index -> resident in VMEM
                  pl.BlockSpec((K, Cout_pad), lambda i: (0, 0))],
        out_specs=pl.BlockSpec((tm, Cout_pad), lambda i: (i, 0)),
        compiler_params=pltpu.CompilerParams(
            dimension_semantics=("parallel",)),
    )(A, Wm)

    # glue: drop the zero-padded Cout lanes (never read downstream) and restore
    # the module's NCHW / f32 contract.  If the consumer accepted NHWC bf16 this
    # slice + transpose pass could be elided entirely.
    feat = out[:, :Cout].astype(jnp.float32).reshape(N, Ho, Wo, Cout)
    return jnp.transpose(feat, (0, 3, 1, 2))


def interpolate_mask_nearest(mask_bool, out_hw):
    """F.interpolate(m[None].float(), size=out_hw).to(bool)[0] -- nearest,
    all batches in a single Pallas launch."""
    N, H, W = mask_bool.shape
    Hf, Wf = int(out_hw[0]), int(out_hw[1])
    m = mask_bool.reshape(N * H, W).astype(jnp.bfloat16)

    # glue: one-hot nearest selectors (src = floor(dst * in / out), matches torch).
    rows_src = (jnp.arange(Hf) * H) // Hf
    R = (rows_src[:, None] == jnp.arange(H)[None, :]).astype(jnp.float32)   # (Hf, H)
    # block-diagonal row selector -> one matmul covers every batch
    Rb = jnp.kron(jnp.eye(N, dtype=jnp.float32), R).astype(jnp.bfloat16)    # (N*Hf, N*H)
    cols_src = (jnp.arange(Wf) * W) // Wf
    C = (jnp.arange(W)[:, None] == cols_src[None, :]).astype(jnp.bfloat16)  # (W, Wf)

    out = pl.pallas_call(
        _mask_interp_kernel,
        out_shape=jax.ShapeDtypeStruct((N * Hf, Wf), jnp.int8),
    )(Rb, m, C)
    return out.reshape(N, Hf, Wf) != 0


class BackboneBasePallas:
    """Pallas equivalent of BackboneBase (body injected as a synthetic conv)."""

    def __init__(self, conv_weight, num_channels):
        self.conv_weight = conv_weight
        self.num_channels = num_channels

    def __call__(self, tensors, mask):
        # xs = self.body(tensor_list.tensors)   (body returns a dict of features)
        xs = {"0": conv3x3_s2_relu(tensors, self.conv_weight)}
        out = {}
        for name, x in xs.items():
            assert mask is not None
            m = interpolate_mask_nearest(mask, x.shape[-2:])
            out[name] = (x, m)  # NestedTensor(x, mask)
        return out


# ---------------------------------------------------------------------------
# Demo
# ---------------------------------------------------------------------------

if __name__ == "__main__":
    key = jax.random.PRNGKey(0)
    kx, kw = jax.random.split(key)

    N, Cin, H, W = 2, 4, 16, 16
    num_channels = 32

    x = jax.random.normal(kx, (N, Cin, H, W), dtype=jnp.float32)
    w = (jax.random.normal(kw, (num_channels, Cin, 3, 3), dtype=jnp.float32)
         * (1.0 / (3 * 3 * Cin) ** 0.5))

    # padding mask like NestedTensor.mask: True = padded pixel
    hh = jnp.arange(H)[None, :, None]
    ww = jnp.arange(W)[None, None, :]
    valid_h = jnp.array([16, 12])[:, None, None]
    valid_w = jnp.array([16, 10])[:, None, None]
    mask = (hh >= valid_h) | (ww >= valid_w)      # (N, H, W) bool

    model = BackboneBasePallas(w, num_channels)
    out = model(x, mask)
    feat, fmask = out["0"]

    feat = jax.block_until_ready(feat)
    fmask = jax.block_until_ready(fmask)

    Ho, Wo = H // 2, W // 2
    assert feat.shape == (N, num_channels, Ho, Wo)
    assert feat.dtype == jnp.float32
    assert fmask.shape == (N, Ho, Wo)
    assert fmask.dtype == jnp.bool_

    # --- numeric check vs a bf16-quantized fp32 reference (conv + ReLU) -----
    # Kernel accumulates in f32 but writes bf16, so allow ~half-ulp-of-bf16.
    xq = x.astype(jnp.bfloat16).astype(jnp.float32)
    wq = w.astype(jnp.bfloat16).astype(jnp.float32)
    ref = jax.lax.conv_general_dilated(
        xq, wq, window_strides=(2, 2), padding=((1, 1), (1, 1)),
        dimension_numbers=("NCHW", "OIHW", "NCHW"),
        precision=jax.lax.Precision.HIGHEST)
    ref = jnp.maximum(ref, 0.0)
    assert float(jnp.max(jnp.abs(feat - ref))) < 5e-2

    # --- exact check of the nearest-neighbour mask resize -------------------
    rows_src = (jnp.arange(Ho) * H) // Ho
    cols_src = (jnp.arange(Wo) * W) // Wo
    mref = mask[:, rows_src, :][:, :, cols_src]
    assert bool(jnp.array_equal(fmask, mref))

    print("KERNEL_OK")
</pallas_src>

<mosaic_0001>
module attributes {stable_mosaic.version = 11 : i64} {
  func.func @_conv_kernel(%arg0: i32, %arg1: memref<64x36xbf16, #tpu.memory_space<vmem>>, %arg2: memref<36x128xbf16, #tpu.memory_space<vmem>>, %arg3: memref<64x128xbf16, #tpu.memory_space<vmem>>) attributes {dimension_semantics = [#tpu.dimension_semantics<parallel>], iteration_bounds = array<i64: 2>, scalar_prefetch = 0 : i64, scratch_operands = 0 : i64, tpu.core_type = #tpu.core_type<tc>, window_params = [{transform_indices = @transform_0, window_bounds = array<i64: 64, 36>}, {pipeline_mode = #tpu.pipeline_mode<synchronous>, transform_indices = @transform_1, window_bounds = array<i64: 36, 128>}, {transform_indices = @transform_2, window_bounds = array<i64: 64, 128>}]} {
    %c0 = arith.constant 0 : index
    %c0_0 = arith.constant 0 : index
    %0 = vector.load %arg1[%c0, %c0_0] : memref<64x36xbf16, #tpu.memory_space<vmem>>, vector<64x36xbf16>
    %c0_1 = arith.constant 0 : index
    %c0_2 = arith.constant 0 : index
    %1 = vector.load %arg2[%c0_1, %c0_2] : memref<36x128xbf16, #tpu.memory_space<vmem>>, vector<36x128xbf16>
    %cst = arith.constant dense<0.000000e+00> : vector<64x128xf32>
    %2 = tpu.matmul %0, %1, %cst {dimension_numbers = #tpu.dot_dimension_numbers<[1], [0], [0], [1], [0, 0, 1, 1], [], []>} : vector<64x36xbf16>, vector<36x128xbf16>, vector<64x128xf32> -> vector<64x128xf32>
    %cst_3 = arith.constant 0.000000e+00 : f32
    %3 = vector.broadcast %cst_3 : f32 to vector<64x128xf32>
    %4 = arith.maximumf %2, %3 : vector<64x128xf32>
    %5 = arith.truncf %4 : vector<64x128xf32> to vector<64x128xbf16>
    %c0_4 = arith.constant 0 : index
    %c0_5 = arith.constant 0 : index
    %6 = vector.load %arg3[%c0_4, %c0_5] : memref<64x128xbf16, #tpu.memory_space<vmem>>, vector<64x128xbf16>
    tpu.vector_store %arg3[%c0_4, %c0_5], %5 {strides = array<i32>} : memref<64x128xbf16, #tpu.memory_space<vmem>>, vector<64x128xbf16>,
    return
  }
  func.func @transform_0(%arg0: i32) -> (i32, i32) {
    %c0_i32 = arith.constant 0 : i32
    %c0_i32_0 = arith.constant 0 : i32
    return %arg0, %c0_i32 : i32, i32
  }
  func.func @transform_1(%arg0: i32) -> (i32, i32) {
    %c0_i32 = arith.constant 0 : i32
    %c0_i32_0 = arith.constant 0 : i32
    %c0_i32_1 = arith.constant 0 : i32
    return %c0_i32, %c0_i32_0 : i32, i32
  }
  func.func @transform_2(%arg0: i32) -> (i32, i32) {
    %c0_i32 = arith.constant 0 : i32
    %c0_i32_0 = arith.constant 0 : i32
    return %arg0, %c0_i32 : i32, i32
  }
}

</mosaic_0001>

<bundles_post_ra>
// kernel: tpu_custom_call.1
= control target key start
LH: loop header
LB: loop body
LE: loop exit
PB: predicated region body
PF: predicated region fallthrough
CT: control target
= control target key end

     0   :  { %7 = vsyncpa [#allocation3], 0  ;;  %s737_s0 = inlined_call_operand.vmem [shape: bf16[128,36], index: 0, kind: input, shape index: {}]   ;;  %s738_s1 = inlined_call_operand.vmem [shape: bf16[36,128], index: 1, kind: input, shape index: {}]   ;;  %s739_s2 = inlined_call_operand.hbm [shape: bf16[128,128], index: 2, kind: output, shape index: {}]  }
   0x1   :  { %9 = vsyncpa [#allocation3 + $0x1], 0  ;;  %s622_s9 = smov 0   ;;  %s624_s10 = smov 0  }
   0x2   :  { %s626_s11 = smov 0   ;;  %s628_s12 = smov 0  }
   0x3 LB: > { %s643_s13 = sadd.s32 4294967295, %s602_s12   ;;  %s400_s14 = sadd.s32 4294967294, %s602_s12   ;;  %s602_s12 = sphi %s628_s12, %s745_s12   ;;  %s598_s11 = sphi %s626_s11, %s744_s11   ;;  %s594_s10 = sphi %s624_s10, %s743_s10   ;;  %s590_s9 = sphi %s622_s9, %s742_s9  }
   0x4   : > { %s647_s15 = sadd.s32 1, %s602_s12   ;;  %s69_s16 = sadd.s32 1, %s598_s11 }
   0x5   : > { %s66_s17 = ssub.s32 %s602_s12, %s647_s15  ;;  %p79_p0 = scmp.ne.s32.totalorder %s598_s11, %s594_s10 }
   0x6   : > { %p67_p1 = scmp.eq.s32.totalorder %s66_s17, 0  ;;  %p80_p2 = scmp.eq.s32.totalorder %s643_s13, 1 }
   0x7   : > { %p85_p3 = scmp.ne.s32.totalorder %s594_s10, %s590_s9  ;;  %p86_p4 = scmp.eq.s32.totalorder %s400_s14, 1 }
   0x8   : > { %s658_s18 = scalar_select %p67_p1, %s598_s11, %s69_s16  }
   0x9   : > { %p660_p5 = por %p80_p2, %p79_p0  ;;  %p664_p6 = por %p86_p4, %p85_p3 }
   0xa   : > { %p403_p7 = scmp.ge.s32.totalorder %s602_s12, 1  ;;  %p116_p8 = scmp.lt.s32.totalorder %s602_s12, 3 }
   0xc   : > { %p117_p9 = pnand %p403_p7, %p116_p8 }
   0xd   : > { %v533_v0 = vld [vmem:[%s738_s1] sm:$0xff] (!%p117_p9)   ;;  %v534_v1 = vld [vmem:[%s738_s1 + $0x8] sm:$0xff] (!%p117_p9)   ;;  %s405_s25 = sshll.u32 (!%p117_p9), %s643_s13, 3  ;;  %v535_v2 = vld [vmem:[%s738_s1 + $0x10] ss:$0 sps:$4 sm:$0x33] (!%p117_p9)  }
   0xe   : > { %120 = sbr.rel (%p117_p9) target bundleno = 260 (0x104), region = 28  ;;  %470 = vmatprep.subr.bf16.mxu0 (!%p117_p9), %v533_v0  ;;  %484 = vmatprep.subr.bf16.mxu1 (!%p117_p9), %v533_v0  ;;  %p139_p10 = scmp.lt.s32.totalorder (!%p117_p9), %s405_s25, 15  ;;  %vm207_vm0 = vcmask (!%p117_p9), 1041408   ;;  %vm194_vm1 = vcmask (!%p117_p9), 293888  }
   0xf   : > { %471 = vmatpush3.bf16.msra.mxu0 (!%p117_p9), %v533_v0  ;;  %487 = vmatpush3.bf16.msra.mxu1 (!%p117_p9), %v533_v0  ;;  %v209_v3 = vsel (!%p117_p9), %vm207_vm0, %v535_v2, 0  ;;  %s135_s4 = sand.u32 (!%p117_p9), 1, %s594_s10   ;;  %s439_s8 = sshll.u32 (!%p117_p9), %s643_s13, 9 }
  0x10   : > { %472 = vmatprep.subr.bf16.mxu0 (!%p117_p9), %v534_v1  ;;  %485 = vmatprep.subr.bf16.mxu1 (!%p117_p9), %v534_v1  ;;  %s404_s5 = sshll.u32 (!%p117_p9), %s135_s4, 5  ;;  %s692_s16 = scalar_lea.hbm (!%p117_p9), %s739_s2, %s439_s8 }
  0x11   : > { %s137_s6 = scalar_lea.vmem (!%p117_p9), [#allocation2], %s404_s5  ;;  %s696_s17 = scalar_lea.sflag (!%p117_p9), [#allocation3], %s135_s4 }
  0x12   : > { %s338_s7 = sshll.u32 (!%p117_p9), %s137_s6, 4  ;;  %s604_s22 = smov (!%p117_p9), [#allocation2]   ;;  %s687_s7 = int_to_ptr.vmem [resolvable:$true] %s338_s7 }
  0x13   : > { %473 = vmatpush3.bf16.msra.mxu0 (!%p117_p9), %v534_v1  ;;  %488 = vmatpush3.bf16.msra.mxu1 (!%p117_p9), %v534_v1  ;;  %s540_s21 = scalar_lea.vmem (!%p117_p9), %s687_s7, 512  ;;  %s544_s23 = sshll.u32 (!%p117_p9), %s604_s22, 4  ;;  %s545_s23 = int_to_ptr.vmem [resolvable:$false] %s544_s23 }
  0x14   : > { %490 = vmatprep.subr.msk.bf16.mxu0 (!%p117_p9), %vm207_vm0, %v535_v2  ;;  %491 = vmatprep.subr.msk.bf16.mxu1 (!%p117_p9), %vm207_vm0, %v535_v2  ;;  %p541_p11 = scmp.ne.s32.totalorder (!%p117_p9), %s687_s7, %s540_s21  ;;  %s546_s24 = scalar_lea.vmem (!%p117_p9), %s545_s23, 1024 }
  0x15   : > { %s747_s25 = smov (!%p139_p10, %s405_s25), 15  ;;  %p547_p0 = scmp.lt.s32.totalorder %s687_s7, %s545_s23 }
  0x16   : > { %s406_s28 = sshll.u32 %s747_s25, 2  ;;  %p542_p12 = pnand %p541_p11, %p660_p5 }
  0x17   : > { %s142_s3 = scalar_lea.vmem %s737_s0, %s406_s28  ;;  %475 = vmatpush3.bf16.msra.mxu0 %v209_v3  ;;  %489 = vmatpush3.bf16.msra.mxu1 %v209_v3  ;;  %p548_p1 = scmp.lt.s32.totalorder %s546_s24, %s540_s21 }
  0x18   : > { %v536_v4 = vld [vmem:[%s142_s3] sm:$0xff]   ;;  %v537_v5 = vld [vmem:[%s142_s3 + $0x10] sm:$0xff]   ;;  %v538_v6 = vld [vmem:[%s142_s3 + $0x8] sm:$0xff]   ;;  %p543_p13 = pneg %p542_p12 }
  0x19   : > { %476 = vmatprep.mubr.msk.bf16.mxu0 %vm194_vm1, %v536_v4  ;;  %v539_v7 = vld [vmem:[%s142_s3 + $0x18] sm:$0xff]   ;;  %480 = vmatprep.mubr.msk.bf16.mxu1 %vm194_vm1, %v537_v5  ;;  %p549_p2 = por %p548_p1, %p547_p0 }
  0x1a   : > { %477 = vmatmul.mubr.msk.bf16.vlgmr.msra.gmra.mrb[0].mxu0 %vm194_vm1, %v538_v6  ;;  %481 = vmatmul.mubr.msk.bf16.vlgmr.msra.gmra.mrb[0].mxu1 %vm194_vm1, %v539_v7 }
  0x1b   : > { %p550_p3 = pnand %p549_p2, %p543_p13 }
  0xed   : > { %v478_v8 = vpop.f32.mrb[0].mxu0  ;;  %v482_v9 = vpop.f32.mrb[0].mxu1 }
  0xee   : > { %v245_v10 = vpop.f32.mrb[1].mxu0  ;;  %v261_v11 = vpop.f32.mrb[1].mxu1  ;;  %v278_v14 = vmax.f32 %v478_v8, 0.0  ;;  %v282_v15 = vmax.f32 %v482_v9, 0.0 }
  0xef   : > { %v479_v12 = vpop.f32.mrb[2].mxu0  ;;  %v483_v13 = vpop.f32.mrb[2].mxu1  ;;  %v276_v20 = vmax.f32 %v245_v10, 0.0  ;;  %v280_v21 = vmax.f32 %v261_v11, 0.0 }
  0xf0   : > { %v279_v16 = vmax.f32 %v479_v12, 0.0  ;;  %v283_v17 = vmax.f32 %v483_v13, 0.0  ;;  %v248_v18 = vpop.f32.mrb[3].mxu0  ;;  %v264_v19 = vpop.f32.mrb[3].mxu1 }
  0xf1   : > { %v277_v22 = vmax.f32 %v248_v18, 0.0  ;;  %v281_v23 = vmax.f32 %v264_v19, 0.0 }
  0xf2   : > { %v448_v24 = vpack.c.bf16 %v279_v16, %v278_v14  ;;  %v458_v25 = vpack.c.bf16 %v283_v17, %v282_v15 }
  0xf3   : > { %v443_v26 = vpack.c.bf16 %v277_v22, %v276_v20  ;;  %v453_v27 = vpack.c.bf16 %v281_v23, %v280_v21 }
  0xf4   : > { %460 = vst [vmem:[%s137_s6 + $0x8] sm:$0xff] %v448_v24   ;;  %462 = vst [vmem:[%s137_s6 + $0x18] sm:$0xff] %v458_v25  }
  0xf5   : > { %444 = vst [vmem:[%s137_s6] sm:$0xff] %v443_v26   ;;  %461 = vst [vmem:[%s137_s6 + $0x10] sm:$0xff] %v453_v27  }
  0xf6   : > { %553 = shalt.err (!%p550_p3)
}
  0xf7   : > { %s554_s25 = scalar_lea.hbm %s692_s16, 512  ;;  %s558_s28 = scalar_lea.hbm %s739_s2, 1024 }
  0xf8   : > { %p555_p4 = scmp.ne.s32.totalorder %s692_s16, %s554_s25  ;;  %p559_p9 = scmp.lt.u32.totalorder %s692_s16, %s739_s2 }
  0xf9   : > { %p560_p10 = scmp.lt.u32.totalorder %s558_s28, %s554_s25  ;;  %p562_p12 = scmp.lt.u32.totalorder %s554_s25, %s692_s16 }
  0xfa   : > { %p556_p7 = pnand %p555_p4, %p660_p5 }
  0xfb   : > { %p561_p11 = por %p560_p10, %p559_p9 }
  0xfc   : > { %p557_p8 = pneg %p556_p7 }
  0xfd   : > { %p563_p13 = por %p562_p12, %p561_p11 }
  0xff   : > { %p564_p0 = pnand %p563_p13, %p557_p8 }
 0x101   : > { %567 = shalt.err (!%p564_p0)
}
 0x102   : > { %s605_s3 = smov 64   ;;  %s606_s4 = smov 4  }
 0x103   : > { %492 = dma.vmem_to_hbm [thread:$0]  (%p660_p5), %s687_s7, 512, %s692_s16, %s696_s17, %s605_s3, %s605_s3, %s606_s4  }
 0x104 PF: > { %p498_p1 = scmp.ge.s32.totalorder %s602_s12, 2  ;;  %s353_s5 = sand.u32 1, %s590_s9  }
 0x105   : > { %s354_s6 = scalar_lea.sflag [#allocation3], %s353_s5 }
 0x106   : > { %p495_p2 = pnand %p498_p1, %p664_p6 }
 0x108   : > { %585 = dma.done.wait (!%p495_p2), %s354_s6, 512  }
 0x109   : > { %587 = vsyncadd (!%p495_p2), %s354_s6, 4294966784  ;;  %p12_p3 = scmp.ge.s32.totalorder %s647_s15, 4   ;;  %s742_s9 = smov %s594_s10 }
 0x10a   : > { %s743_s10 = smov %s598_s11  ;;  %s744_s11 = smov %s658_s18 }
 0x10b   : > { %s745_s12 = smov %s647_s15  ;;  %14 = sbr.rel (!%p12_p3) target bundleno = 3 (0x3), region = 63 }
 0x112   :  { %359 = vsyncpa [#allocation3], 1 }
 0x113   :  { %361 = vsyncpa [#allocation3 + $0x1], 1 }

</bundles_post_ra>
